<compile_context>
chip_gen: v7x
topology: tpu7x:2x2x1
jax: 0.10.0
libtpu: 0.0.40
codegen_flags: <defaults>
</compile_context>

<pallas_src>
import functools

import jax
import jax.numpy as jnp
from jax import lax
from jax.experimental import pallas as pl
from jax.experimental.pallas import tpu as pltpu


def _round_up(x, m):
    return ((x + m - 1) // m) * m


def _bow_pool_kernel(sub_ref, w_ref, out_ref, acc_ref, *, pad_index, bow_dtype):
    """Grid = (token tiles [parallel], vocab chunks [arbitrary / reduction]).

    Per step: build the bag-of-words count matrix for this vocab chunk on the
    VPU, run ONE MXU matmul against the fused (embedding @ projection) weight
    chunk, accumulate in f32 scratch.  On the last vocab chunk, divide by the
    non-pad sub-token count (mean pooling) and store the lane-dense tile.
    """
    j = pl.program_id(1)

    @pl.when(j == 0)
    def _():
        acc_ref[...] = jnp.zeros_like(acc_ref)

    sub = sub_ref[...]                               # [TN, F] int32
    TN, F = sub.shape
    VC = w_ref.shape[0]                              # vocab-chunk size

    # bow[n, v] = #{f : sub[n, f] == j*VC + v}.  No per-slot pad mask needed:
    # the pad_index row of the fused weight is zeroed in the wrapper, so pad
    # sub-tokens contribute nothing to the matmul (requires pad_index < V).
    vocab_iota = lax.broadcasted_iota(jnp.int32, (TN, VC), 1) + j * VC
    bow = jnp.zeros((TN, VC), dtype=bow_dtype)
    for f in range(F):                               # F small & static -> unrolled VPU work
        bow = bow + (vocab_iota == sub[:, f:f + 1]).astype(bow_dtype)

    # Counts <= F are exact in bf16; accumulation stays f32 on the MXU.
    acc_ref[...] += jnp.dot(bow.astype(jnp.bfloat16), w_ref[...],
                            preferred_element_type=jnp.float32)

    @pl.when(j == pl.num_programs(1) - 1)
    def _():
        mask = (sub != pad_index)                                        # [TN, F]
        counts = jnp.sum(mask.astype(jnp.float32), axis=1, keepdims=True)
        counts = jnp.maximum(counts, 1.0)                                # masked_fill_(eq(0), 1)
        inv_counts = 1.0 / counts          # exact divide on TN scalars (cheap)
        out_ref[...] = (acc_ref[...] * inv_counts).astype(out_ref.dtype)


def prepare_fused_weight(emb_table, proj_w, pad_index=0, v_chunk=None):
    """Once per weight set (hoisted out of the forward path):
       W = emb_table @ proj_w  [V, n_out], pad_index row zeroed, n_out padded
       to a lane-dense multiple of 128, V padded to a multiple of v_chunk,
       cast to bf16 for the MXU.  Returns (w_fused [V_pad, n_out_pad], v_chunk).
    """
    V, H = emb_table.shape
    n_out = proj_w.shape[1]
    assert 0 <= pad_index < V, "pad_index must index a real vocab row"

    if v_chunk is None:
        v_chunk = min(2048, _round_up(V, 8))         # small vocab -> single chunk
    n_out_pad = _round_up(n_out, 128)
    v_pad = _round_up(V, v_chunk)

    w = jnp.dot(emb_table.astype(jnp.float32), proj_w.astype(jnp.float32))
    w = w.at[pad_index].set(0.0)                     # pad ids contribute zero
    w_fused = jnp.zeros((v_pad, n_out_pad), jnp.bfloat16)
    w_fused = w_fused.at[:V, :n_out].set(w.astype(jnp.bfloat16))
    return w_fused, v_chunk


def _default_tiling(n_tokens):
    """Chip-aware defaults: v5e has no bf16 VALU and a 128-wide MXU ->
    tile_n=128 / f32 bow; v6e/v7x have bf16 VALU and 256-wide MXUs ->
    tile_n=256 / bf16 bow.  Keep >=2 parallel grid steps at small N so both
    v7x TensorCores get work."""
    try:
        kind = jax.devices()[0].device_kind.lower()
    except Exception:  # pragma: no cover
        kind = ""
    if "v5" in kind:
        tile_n, bow_dtype = 128, jnp.float32
    else:
        tile_n, bow_dtype = 256, jnp.bfloat16
    if n_tokens <= tile_n:
        tile_n = 128
    return tile_n, bow_dtype


def bert_embedding_finetuning_forward(subwords, w_fused, *, n_out, v_chunk,
                                      pad_index=0, tile_n=None, bow_dtype=None,
                                      out_dtype=jnp.float32):
    """subwords: [B, S, F] int token ids; (w_fused, v_chunk) from
    prepare_fused_weight.  Returns [B, S, n_out] in out_dtype."""
    B, S, F = subwords.shape
    v_pad, n_out_pad = w_fused.shape
    assert v_pad % v_chunk == 0

    N = B * S
    # No wrapper-side row padding: Pallas masks the ragged last token tile
    # (out-of-range rows are never stored), saving an HBM round trip of the ids.
    sub2d = subwords.reshape(N, F).astype(jnp.int32)

    dflt_tile, dflt_bow = _default_tiling(N)
    tile_n = tile_n or dflt_tile
    bow_dtype = bow_dtype or dflt_bow

    n_tiles = pl.cdiv(N, tile_n)
    n_vchunks = v_pad // v_chunk

    kernel = functools.partial(_bow_pool_kernel, pad_index=pad_index,
                               bow_dtype=bow_dtype)

    out2d = pl.pallas_call(
        kernel,
        out_shape=jax.ShapeDtypeStruct((N, n_out_pad), out_dtype),
        grid=(n_tiles, n_vchunks),
        in_specs=[
            pl.BlockSpec((tile_n, F), lambda i, j: (i, 0)),          # token-id tile
            # Fused-weight chunk; the full fused table at BERT scale is only
            # V * n_out_pad bf16 (~7.8 MB for 30522x128), so even the default
            # double-buffered chunk blocks fit v7x's 64 MiB VMEM comfortably.
            pl.BlockSpec((v_chunk, n_out_pad), lambda i, j: (j, 0)),
        ],
        out_specs=pl.BlockSpec((tile_n, n_out_pad), lambda i, j: (i, 0)),
        scratch_shapes=[pltpu.VMEM((tile_n, n_out_pad), jnp.float32)],
        compiler_params=pltpu.CompilerParams(
            dimension_semantics=("parallel", "arbitrary"),
            vmem_limit_bytes=32 * 1024 * 1024),
    )(sub2d, w_fused)

    return out2d[:, :n_out].reshape(B, S, n_out)


def _reference(subwords, emb_table, proj_w, pad_index=0):
    """Pure-JAX f32 reference with the same semantics (for verification)."""
    mask = (subwords != pad_index)                               # [B,S,F]
    bert = emb_table[subwords] * mask[..., None]                 # [B,S,F,H]
    lens = jnp.maximum(mask.sum(-1), 1).astype(jnp.float32)      # [B,S]
    pooled = bert.sum(2) / lens[..., None]                       # [B,S,H]
    return pooled @ proj_w                                       # [B,S,n_out]


if __name__ == "__main__":
    # Small, module-consistent shapes (B, seq_len, fix_len / vocab, hidden, n_out).
    B, S, F = 2, 80, 4        # N = 160 tokens -> 2 parallel row tiles of 128
    V, H, N_OUT = 64, 32, 16
    PAD = 0

    key = jax.random.PRNGKey(0)
    k_sub, k_emb, k_proj, k_mask = jax.random.split(key, 4)

    # Token ids; randomly pad some sub-token slots with pad_index.
    subwords = jax.random.randint(k_sub, (B, S, F), 1, V, dtype=jnp.int32)
    drop = jax.random.bernoulli(k_mask, 0.3, (B, S, F))
    subwords = jnp.where(drop, PAD, subwords)

    # Deterministic synthetic parameters (stand-in BERT embedding + projection).
    emb_table = jax.random.normal(k_emb, (V, H), dtype=jnp.float32) * 0.02
    # nn.Linear(H, N_OUT, bias=False) has weight [N_OUT, H]; kernel takes W^T.
    proj_weight = jax.random.normal(k_proj, (N_OUT, H), dtype=jnp.float32) * 0.02
    proj_w = proj_weight.T                                        # [H, N_OUT]

    # Weight prep is done once per weight set, not per forward call.
    w_fused, v_chunk = prepare_fused_weight(emb_table, proj_w, pad_index=PAD)

    out = bert_embedding_finetuning_forward(subwords, w_fused, n_out=N_OUT,
                                            v_chunk=v_chunk, pad_index=PAD)
    out = jax.block_until_ready(out)

    ref = _reference(subwords, emb_table, proj_w, pad_index=PAD)
    assert out.shape == (B, S, N_OUT)
    # Tolerance accounts for the single bf16 fused-weight quantization.
    assert jnp.allclose(out, ref, atol=2e-4, rtol=2e-2), "mismatch vs reference"

    print("KERNEL_OK")
</pallas_src>

<mosaic_0001>
module attributes {stable_mosaic.version = 11 : i64} {
  func.func @_bow_pool_kernel(%arg0: i32, %arg1: i32, %arg2: memref<128x4xi32, #tpu.memory_space<vmem>>, %arg3: memref<64x128xbf16, #tpu.memory_space<vmem>>, %arg4: memref<128x128xf32, #tpu.memory_space<vmem>>, %arg5: memref<128x128xf32, #tpu.memory_space<vmem>>) attributes {dimension_semantics = [#tpu.dimension_semantics<parallel>, #tpu.dimension_semantics<arbitrary>], iteration_bounds = array<i64: 2, 1>, scalar_prefetch = 0 : i64, scratch_operands = 1 : i64, tpu.core_type = #tpu.core_type<tc>, window_params = [{transform_indices = @transform_0, window_bounds = array<i64: 128, 4>}, {transform_indices = @transform_1, window_bounds = array<i64: 64, 128>}, {transform_indices = @transform_2, window_bounds = array<i64: 128, 128>}]} {
    %c0_i32 = arith.constant 0 : i32
    %0 = arith.cmpi eq, %arg1, %c0_i32 : i32
    %1 = arith.extui %0 : i1 to i32
    %c0_i32_0 = arith.constant 0 : i32
    %2 = arith.cmpi ne, %1, %c0_i32_0 : i32
    scf.if %2 {
      %cst_11 = arith.constant 0.000000e+00 : f32
      %45 = vector.broadcast %cst_11 : f32 to vector<128x128xf32>
      %c0_12 = arith.constant 0 : index
      %c0_13 = arith.constant 0 : index
      %46 = vector.load %arg5[%c0_12, %c0_13] : memref<128x128xf32, #tpu.memory_space<vmem>>, vector<128x128xf32>
      tpu.vector_store %arg5[%c0_12, %c0_13], %45 {strides = array<i32>} : memref<128x128xf32, #tpu.memory_space<vmem>>, vector<128x128xf32>,
    } else {
    }
    %c0 = arith.constant 0 : index
    %c0_1 = arith.constant 0 : index
    %3 = vector.load %arg2[%c0, %c0_1] : memref<128x4xi32, #tpu.memory_space<vmem>>, vector<128x4xi32>
    %4 = tpu.iota {dimensions = array<i32: 1>} : vector<128x64xi32>
    %c64_i32 = arith.constant 64 : i32
    %5 = arith.muli %arg1, %c64_i32 : i32
    %6 = vector.broadcast %5 : i32 to vector<128x64xi32>
    %7 = arith.addi %4, %6 : vector<128x64xi32>
    %cst = arith.constant 0.000000e+00 : bf16
    %8 = vector.broadcast %cst : bf16 to vector<128x64xbf16>
    %9 = vector.extract_strided_slice %3 {offsets = [0, 0], sizes = [128, 1], strides = [1, 1]} : vector<128x4xi32> to vector<128x1xi32>
    %10 = vector.broadcast %9 : vector<128x1xi32> to vector<128x64xi32>
    %11 = arith.cmpi eq, %7, %10 : vector<128x64xi32>
    %12 = arith.extui %11 : vector<128x64xi1> to vector<128x64xi32>
    %13 = arith.sitofp %12 : vector<128x64xi32> to vector<128x64xf32>
    %14 = arith.truncf %13 : vector<128x64xf32> to vector<128x64xbf16>
    %15 = arith.addf %8, %14 : vector<128x64xbf16>
    %16 = vector.extract_strided_slice %3 {offsets = [0, 1], sizes = [128, 1], strides = [1, 1]} : vector<128x4xi32> to vector<128x1xi32>
    %17 = vector.broadcast %16 : vector<128x1xi32> to vector<128x64xi32>
    %18 = arith.cmpi eq, %7, %17 : vector<128x64xi32>
    %19 = arith.extui %18 : vector<128x64xi1> to vector<128x64xi32>
    %20 = arith.sitofp %19 : vector<128x64xi32> to vector<128x64xf32>
    %21 = arith.truncf %20 : vector<128x64xf32> to vector<128x64xbf16>
    %22 = arith.addf %15, %21 : vector<128x64xbf16>
    %23 = vector.extract_strided_slice %3 {offsets = [0, 2], sizes = [128, 1], strides = [1, 1]} : vector<128x4xi32> to vector<128x1xi32>
    %24 = vector.broadcast %23 : vector<128x1xi32> to vector<128x64xi32>
    %25 = arith.cmpi eq, %7, %24 : vector<128x64xi32>
    %26 = arith.extui %25 : vector<128x64xi1> to vector<128x64xi32>
    %27 = arith.sitofp %26 : vector<128x64xi32> to vector<128x64xf32>
    %28 = arith.truncf %27 : vector<128x64xf32> to vector<128x64xbf16>
    %29 = arith.addf %22, %28 : vector<128x64xbf16>
    %30 = vector.extract_strided_slice %3 {offsets = [0, 3], sizes = [128, 1], strides = [1, 1]} : vector<128x4xi32> to vector<128x1xi32>
    %31 = vector.broadcast %30 : vector<128x1xi32> to vector<128x64xi32>
    %32 = arith.cmpi eq, %7, %31 : vector<128x64xi32>
    %33 = arith.extui %32 : vector<128x64xi1> to vector<128x64xi32>
    %34 = arith.sitofp %33 : vector<128x64xi32> to vector<128x64xf32>
    %35 = arith.truncf %34 : vector<128x64xf32> to vector<128x64xbf16>
    %36 = arith.addf %29, %35 : vector<128x64xbf16>
    %c0_2 = arith.constant 0 : index
    %c0_3 = arith.constant 0 : index
    %37 = vector.load %arg5[%c0_2, %c0_3] : memref<128x128xf32, #tpu.memory_space<vmem>>, vector<128x128xf32>
    %c0_4 = arith.constant 0 : index
    %c0_5 = arith.constant 0 : index
    %38 = vector.load %arg3[%c0_4, %c0_5] : memref<64x128xbf16, #tpu.memory_space<vmem>>, vector<64x128xbf16>
    %cst_6 = arith.constant dense<0.000000e+00> : vector<128x128xf32>
    %39 = tpu.matmul %36, %38, %cst_6 {dimension_numbers = #tpu.dot_dimension_numbers<[1], [0], [0], [1], [0, 0, 1, 1], [], []>} : vector<128x64xbf16>, vector<64x128xbf16>, vector<128x128xf32> -> vector<128x128xf32>
    %40 = arith.addf %37, %39 : vector<128x128xf32>
    %c0_7 = arith.constant 0 : index
    %c0_8 = arith.constant 0 : index
    %41 = vector.load %arg5[%c0_7, %c0_8] : memref<128x128xf32, #tpu.memory_space<vmem>>, vector<128x128xf32>
    tpu.vector_store %arg5[%c0_7, %c0_8], %40 {strides = array<i32>} : memref<128x128xf32, #tpu.memory_space<vmem>>, vector<128x128xf32>,
    %c0_i32_9 = arith.constant 0 : i32
    %42 = arith.cmpi eq, %arg1, %c0_i32_9 : i32
    %43 = arith.extui %42 : i1 to i32
    %c0_i32_10 = arith.constant 0 : i32
    %44 = arith.cmpi ne, %43, %c0_i32_10 : i32
    scf.if %44 {
      %c0_i32_11 = arith.constant 0 : i32
      %45 = vector.broadcast %c0_i32_11 : i32 to vector<128x4xi32>
      %46 = arith.cmpi ne, %3, %45 : vector<128x4xi32>
      %47 = arith.extui %46 : vector<128x4xi1> to vector<128x4xi32>
      %48 = arith.sitofp %47 : vector<128x4xi32> to vector<128x4xf32>
      %cst_12 = arith.constant dense<0.000000e+00> : vector<128xf32>
      %49 = vector.multi_reduction <add>, %48, %cst_12 [1] : vector<128x4xf32> to vector<128xf32>
      %50 = vector.shape_cast %49 : vector<128xf32> to vector<128x1xf32>
      %cst_13 = arith.constant 1.000000e+00 : f32
      %51 = vector.broadcast %cst_13 : f32 to vector<128x1xf32>
      %52 = arith.maximumf %50, %51 : vector<128x1xf32>
      %cst_14 = arith.constant 1.000000e+00 : f32
      %53 = vector.broadcast %cst_14 : f32 to vector<128x1xf32>
      %54 = arith.divf %53, %52 : vector<128x1xf32>
      %c0_15 = arith.constant 0 : index
      %c0_16 = arith.constant 0 : index
      %55 = vector.load %arg5[%c0_15, %c0_16] : memref<128x128xf32, #tpu.memory_space<vmem>>, vector<128x128xf32>
      %56 = vector.broadcast %54 : vector<128x1xf32> to vector<128x128xf32>
      %57 = arith.mulf %55, %56 : vector<128x128xf32>
      %c0_17 = arith.constant 0 : index
      %c0_18 = arith.constant 0 : index
      %58 = vector.load %arg4[%c0_17, %c0_18] : memref<128x128xf32, #tpu.memory_space<vmem>>, vector<128x128xf32>
      tpu.vector_store %arg4[%c0_17, %c0_18], %57 {strides = array<i32>} : memref<128x128xf32, #tpu.memory_space<vmem>>, vector<128x128xf32>,
    } else {
    }
    return
  }
  func.func @transform_0(%arg0: i32, %arg1: i32) -> (i32, i32) {
    %c0_i32 = arith.constant 0 : i32
    %c0_i32_0 = arith.constant 0 : i32
    return %arg0, %c0_i32 : i32, i32
  }
  func.func @transform_1(%arg0: i32, %arg1: i32) -> (i32, i32) {
    %c0_i32 = arith.constant 0 : i32
    %c0_i32_0 = arith.constant 0 : i32
    return %arg1, %c0_i32 : i32, i32
  }
  func.func @transform_2(%arg0: i32, %arg1: i32) -> (i32, i32) {
    %c0_i32 = arith.constant 0 : i32
    %c0_i32_0 = arith.constant 0 : i32
    return %arg0, %c0_i32 : i32, i32
  }
}

</mosaic_0001>

<bundles_post_ra>
// kernel: tpu_custom_call.1
= control target key start
LH: loop header
LB: loop body
LE: loop exit
PB: predicated region body
PF: predicated region fallthrough
CT: control target
= control target key end

     0   :  { %7 = vsyncpa [#allocation4], 0  ;;  %s2221_s0 = inlined_call_operand.vmem [shape: s32[160,4], index: 0, kind: input, shape index: {}]   ;;  %s2222_s1 = inlined_call_operand.vmem [shape: bf16[64,128], index: 1, kind: input, shape index: {}]   ;;  %s2223_s2 = inlined_call_operand.hbm [shape: f32[160,128], index: 2, kind: output, shape index: {}]  }
   0x1   :  { %9 = vsyncpa [#allocation4 + $0x1], 0  ;;  %s1563_s9 = smov 0   ;;  %s1565_s10 = smov 0  }
   0x2   :  { %s1567_s11 = smov 0   ;;  %s1569_s12 = smov 0  }
   0x3   :  { %s1571_s13 = smov 0   ;;  %s1573_s14 = smov 0  }
   0x4 LB: > { %s1196_s15 = sadd.s32 4294967295, %s1538_s14   ;;  %s1197_s16 = sadd.s32 4294967294, %s1538_s14   ;;  %s1538_s14 = sphi %s1573_s14, %s15_s14   ;;  %s1534_s13 = sphi %s1571_s13, %s2230_s13   ;;  %s1530_s12 = sphi %s1569_s12, %s2229_s12   ;;  %s1526_s11 = sphi %s1567_s11, %s2228_s11   ;;  %s1522_s10 = sphi %s1565_s10, %s2227_s10   ;;  %s1518_s9 = sphi %s1563_s9, %s2226_s9  }
   0x5   : > { %s27_s17 = sadd.s32 1, %s1534_s13  ;;  %s86_s18 = sadd.s32 1, %s1526_s11 }
   0x6   : > { %p29_p0 = scmp.ge.s32.totalorder %s27_s17, 2  ;;  %p96_p1 = scmp.ne.s32.totalorder %s1526_s11, %s1522_s10 }
   0x7   : > { %p97_p2 = scmp.eq.s32.totalorder %s1196_s15, 1  ;;  %p102_p3 = scmp.ne.s32.totalorder %s1522_s10, %s1518_s9 }
   0x8   : > { %s2232_s17 = smov (%p29_p0, %s27_s17), 0  ;;  %p103_p5 = scmp.eq.s32.totalorder %s1197_s16, 1 }
   0x9   : > { %p1603_p4 = por %p97_p2, %p96_p1  ;;  %s83_s20 = ssub.s32 %s1534_s13, %s2232_s17 }
   0xa   : > { %p1201_p6 = scmp.ge.s32.totalorder %s1538_s14, 1  ;;  %p84_p7 = scmp.eq.s32.totalorder %s83_s20, 0 }
   0xb   : > { %p1610_p8 = por %p103_p5, %p102_p3  ;;  %p147_p9 = scmp.lt.s32.totalorder %s1538_s14, 3 }
   0xc   : > { %s1616_s22 = scalar_select %p84_p7, %s1526_s11, %s86_s18  }
   0xd   : > { %p148_p10 = pnand %p1201_p6, %p147_p9 }
   0xe   : > { %s1619_s23 = sshll.u32 (!%p148_p10), %s1530_s12, 4  ;;  %v1540_v0 = vmov (!%p148_p10), 0   ;;  %v1541_v10 = vmov (!%p148_p10), 1   ;;  %v1542_v13 = vmov (!%p148_p10), 2   ;;  %v1543_v17 = vmov (!%p148_p10), 3   ;;  %v1424_v20 = vld [vmem:[%s2222_s1] sm:$0xff] (!%p148_p10)  }
   0xf   : > { %151 = sbr.rel (%p148_p10) target bundleno = 550 (0x226), region = 28  ;;  %1413 = vset.pattern.permute.xlu1 (!%p148_p10), %v1540_v0  ;;  %1412 = vset.pattern.permute.xlu0 (!%p148_p10), %v1540_v0  ;;  %p183_p11 = scmp.lt.s32.totalorder (!%p148_p10), %s1619_s23, 19  ;;  %v1425_v21 = vld [vmem:[%s2222_s1 + $0x8] sm:$0xff] (!%p148_p10)   ;;  %v1426_v22 = vld [vmem:[%s2222_s1 + $0x10] sm:$0xff] (!%p148_p10)   ;;  %v1427_v23 = vld [vmem:[%s2222_s1 + $0x18] sm:$0xff] (!%p148_p10)   ;;  %v240_v24 = vlaneseq (!%p148_p10)  ;;  %v1544_v28 = vmov (!%p148_p10), 0.0  }
  0x10   : > { %1319 = vmatprep.subr.bf16.mxu0 (!%p148_p10), %v1424_v20  ;;  %1343 = vmatprep.subr.bf16.mxu1 (!%p148_p10), %v1424_v20  ;;  %vm946_vm9 = vcmask (!%p148_p10), 31744   ;;  %s175_s15 = sand.u32 (!%p148_p10), 1, %s1522_s10  }
  0x11   : > { %1320 = vmatpush3.bf16.msra.mxu0 (!%p148_p10), %v1424_v20  ;;  %1347 = vmatpush3.bf16.msra.mxu1 (!%p148_p10), %v1424_v20  ;;  %v1759_v25 = vand.u32 (!%p148_p10), 127, %v240_v24  ;;  %s1202_s16 = sshll.u32 (!%p148_p10), %s175_s15, 7  ;;  %s2155_s20 = scalar_lea.sflag (!%p148_p10), [#allocation4], %s175_s15 }
  0x12   : > { %1321 = vmatprep.subr.bf16.mxu0 (!%p148_p10), %v1425_v21  ;;  %1344 = vmatprep.subr.bf16.mxu1 (!%p148_p10), %v1425_v21  ;;  %s2131_s18 = scalar_lea.vmem (!%p148_p10), [#allocation3], %s1202_s16 }
  0x15   : > { %1322 = vmatpush3.bf16.msra.mxu0 (!%p148_p10), %v1425_v21  ;;  %1348 = vmatpush3.bf16.msra.mxu1 (!%p148_p10), %v1425_v21 }
  0x16   : > { %s184_s24 = scalar_select %p183_p11, %s1619_s23, 19  ;;  %1323 = vmatprep.subr.bf16.mxu0 %v1426_v22  ;;  %1345 = vmatprep.subr.bf16.mxu1 %v1426_v22 }
  0x18   : > { %s1204_s25 = sshll.u32 %s184_s24, 3  ;;  %s1100_s24 = ssub.s32 (%p1603_p4), 20, %s1619_s23 }
  0x19   : > { %s1628_s28 = scalar_lea.vmem %s2221_s0, %s1204_s25  ;;  %1324 = vmatpush3.bf16.msra.mxu0 %v1426_v22  ;;  %1349 = vmatpush3.bf16.msra.mxu1 %v1426_v22  ;;  %p1101_p12 = scmp.lt.s32.totalorder (%p1603_p4), %s1100_s24, 16 }
  0x1a   : > { %v1631_v1 = vld [vmem:[%s1628_s28 + $0x40] sm:$0xff]  ;;  %v1639_v3 = vld [vmem:[%s1628_s28 + $0x48] sm:$0xff]  ;;  %v1647_v5 = vld [vmem:[%s1628_s28 + $0x18] sm:$0xff]  ;;  %1325 = vmatprep.subr.bf16.mxu0 %v1427_v23  ;;  %1346 = vmatprep.subr.bf16.mxu1 %v1427_v23 }
  0x1b   : > { %v1634_v2 = vld [vmem:[%s1628_s28] sm:$0xff]  ;;  %270 = vperm.xlu1 %1413, %v1631_v1   ;;  %v1642_v4 = vld [vmem:[%s1628_s28 + $0x8] sm:$0xff]  ;;  %v1650_v6 = vld [vmem:[%s1628_s28 + $0x10] sm:$0xff]  ;;  %vm906_vm13 = vcmp.ne.s32.totalorder %v1631_v1, 0 }
  0x1c   : > { %246 = vperm.xlu0 %1412, %v1634_v2   ;;  %v1655_v7 = vld [vmem:[%s1628_s28 + $0x58] sm:$0xff]  ;;  %v1658_v8 = vld [vmem:[%s1628_s28 + $0x50] sm:$0xff]  ;;  %v1663_v9 = vld [vmem:[%s1628_s28 + $0x28] sm:$0xff]  ;;  %vm899_vm6 = vcmp.ne.s32.totalorder %v1642_v4, 0  ;;  %vm900_vm10 = vcmp.ne.s32.totalorder %v1650_v6, 0  ;;  %v1289_v63 = vsel %vm906_vm13, 1.0, %v1544_v28 }
  0x1d   : > { %v1669_v11 = vld [vmem:[%s1628_s28 + $0x30] sm:$0xff]  ;;  %v1689_v14 = vld [vmem:[%s1628_s28 + $0x20] sm:$0xff]  ;;  %v1694_v15 = vld [vmem:[%s1628_s28 + $0x68] sm:$0xff]  ;;  %1326 = vmatpush3.bf16.msra.mxu0 %v1427_v23  ;;  %1350 = vmatpush3.bf16.msra.mxu1 %v1427_v23  ;;  %v1282_v44 = vsel %vm899_vm6, 1.0, %v1544_v28  ;;  %v1283_v51 = vsel %vm900_vm10, 1.0, %v1544_v28  ;;  %vm908_vm14 = vcmp.ne.s32.totalorder %v1658_v8, 0 }
  0x1e   : > { %v1674_v12 = vld [vmem:[%s1628_s28 + $0x70] sm:$0xff]  ;;  %v1699_v16 = vld [vmem:[%s1628_s28 + $0x38] sm:$0xff]  ;;  %v1718_v19 = vld [vmem:[%s1628_s28 + $0x60] sm:$0xff]  ;;  %v950_v49 = vsel %vm946_vm9, %v1282_v44, 0.0  ;;  %v953_v53 = vsel %vm946_vm9, %v1283_v51, 0.0  ;;  %vm902_vm11 = vcmp.ne.s32.totalorder %v1689_v14, 0 }
  0x1f   : > { %273 = vperm.xlu1 %1413, %v1639_v3   ;;  %v1704_v18 = vld [vmem:[%s1628_s28 + $0x78] sm:$0xff]  ;;  %v1285_v55 = vsel %vm902_vm11, 1.0, %v1544_v28  ;;  %vm904_vm12 = vcmp.ne.s32.totalorder %v1669_v11, 0  ;;  %vm910_vm15 = vcmp.ne.s32.totalorder %v1718_v19, 0  ;;  %vm909_vm6 = vcmp.ne.s32.totalorder %v1655_v7, 0 }
  0x20   : > { %249 = vperm.xlu0 %1412, %v1642_v4   ;;  %v959_v57 = vsel %vm946_vm9, %v1285_v55, 0.0  ;;  %v1287_v59 = vsel %vm904_vm12, 1.0, %v1544_v28 }
  0x21   : > { %v965_v60 = vsel %vm946_vm9, %v1287_v59, 0.0 }
  0x23   : > { %255 = vperm.xlu1 %1413, %v1647_v5  }
  0x24   : > { %252 = vperm.xlu0 %1412, %v1650_v6  }
  0x27   : > { %279 = vperm.xlu1 %1413, %v1655_v7  }
  0x28   : > { %276 = vperm.xlu0 %1412, %v1658_v8  }
  0x2b   : > { %1414 = vset.pattern.permute.xlu1 %v1541_v10 }
  0x2c   : > { %261 = vperm.xlu0 %1412, %v1663_v9   ;;  %361 = vperm.xlu1 %1414, %v1642_v4  }
  0x30   : > { %264 = vperm.xlu0 %1412, %v1669_v11   ;;  %382 = vperm.xlu1 %1414, %v1631_v1  }
  0x34   : > { %288 = vperm.xlu0 %1412, %v1674_v12   ;;  %364 = vperm.xlu1 %1414, %v1650_v6  }
  0x38   : > { %1418 = vset.pattern.permute.xlu0 %v1541_v10  ;;  %388 = vperm.xlu1 %1414, %v1658_v8  }
  0x39   : > { %358 = vperm.xlu0 %1418, %v1634_v2  }
  0x3c   : > { %1415 = vset.pattern.permute.xlu1 %v1542_v13 }
  0x3d   : > { %385 = vperm.xlu0 %1418, %v1639_v3   ;;  %470 = vperm.xlu1 %1415, %v1634_v2  }
  0x41   : > { %367 = vperm.xlu0 %1418, %v1647_v5   ;;  %494 = vperm.xlu1 %1415, %v1631_v1  }
  0x45   : > { %391 = vperm.xlu0 %1418, %v1655_v7   ;;  %497 = vperm.xlu1 %1415, %v1639_v3  }
  0x49   : > { %370 = vperm.xlu0 %1418, %v1689_v14   ;;  %479 = vperm.xlu1 %1415, %v1647_v5  }
  0x4d   : > { %397 = vperm.xlu0 %1418, %v1694_v15   ;;  %503 = vperm.xlu1 %1415, %v1655_v7  }
  0x51   : > { %379 = vperm.xlu0 %1418, %v1699_v16   ;;  %1416 = vset.pattern.permute.xlu1 %v1543_v17 }
  0x52   : > { %585 = vperm.xlu1 %1416, %v1642_v4  }
  0x55   : > { %403 = vperm.xlu0 %1418, %v1704_v18  }
  0x56   : > { %606 = vperm.xlu1 %1416, %v1631_v1  }
  0x59   : > { %1420 = vset.pattern.permute.xlu0 %v1542_v13 }
  0x5a   : > { %473 = vperm.xlu0 %1420, %v1642_v4   ;;  %588 = vperm.xlu1 %1416, %v1650_v6  }
  0x5e   : > { %476 = vperm.xlu0 %1420, %v1650_v6   ;;  %612 = vperm.xlu1 %1416, %v1658_v8   ;;  %v1291_v6 = vsel %vm908_vm14, 1.0, %v1544_v28 }
  0x5f   : > { %v977_v1 = vsel %vm946_vm9, %v1291_v6, 0.0 }
  0x62   : > { %500 = vperm.xlu0 %1420, %v1658_v8   ;;  %1417 = vset.pattern.permute.xlu1 %v1540_v0  ;;  %v971_v0 = vsel %vm946_vm9, %v1289_v63, 0.0 }
  0x63   : > { %258 = vperm.xlu1 %1417, %v1689_v14  }
  0x66   : > { %485 = vperm.xlu0 %1420, %v1663_v9  }
  0x67   : > { %282 = vperm.xlu1 %1417, %v1718_v19  }
  0x6a   : > { %488 = vperm.xlu0 %1420, %v1669_v11  }
  0x6b   : > { %285 = vperm.xlu1 %1417, %v1694_v15  }
  0x6e   : > { %512 = vperm.xlu0 %1420, %v1674_v12  }
  0x6f   : > { %267 = vperm.xlu1 %1417, %v1699_v16  }
  0x72   : > { %1422 = vset.pattern.permute.xlu0 %v1543_v17 }
  0x73   : > { %582 = vperm.xlu0 %1422, %v1634_v2   ;;  %291 = vperm.xlu1 %1417, %v1704_v18  }
  0x77   : > { %609 = vperm.xlu0 %1422, %v1639_v3   ;;  %1419 = vset.pattern.permute.xlu1 %v1541_v10 }
  0x78   : > { %373 = vperm.xlu1 %1419, %v1663_v9  }
  0x7b   : > { %591 = vperm.xlu0 %1422, %v1647_v5  }
  0x7c   : > { %394 = vperm.xlu1 %1419, %v1718_v19  }
  0x7f   : > { %615 = vperm.xlu0 %1422, %v1655_v7  }
  0x80   : > { %376 = vperm.xlu1 %1419, %v1669_v11  }
  0x83   : > { %594 = vperm.xlu0 %1422, %v1689_v14  }
  0x84   : > { %400 = vperm.xlu1 %1419, %v1674_v12  }
  0x87   : > { %621 = vperm.xlu0 %1422, %v1694_v15  }
  0x88   : > { %1421 = vset.pattern.permute.xlu1 %v1542_v13  ;;  %v1293_v13 = vsel %vm910_vm15, 1.0, %v1544_v28 }
  0x89   : > { %482 = vperm.xlu1 %1421, %v1689_v14   ;;  %v983_v8 = vsel %vm946_vm9, %v1293_v13, 0.0 }
  0x8b   : > { %603 = vperm.xlu0 %1422, %v1699_v16  }
  0x8d   : > { %506 = vperm.xlu1 %1421, %v1718_v19  }
  0x8f   : > { %627 = vperm.xlu0 %1422, %v1704_v18  }
  0x91   : > { %509 = vperm.xlu1 %1421, %v1694_v15  }
  0x95   : > { %491 = vperm.xlu1 %1421, %v1699_v16  }
  0x99   : > { %515 = vperm.xlu1 %1421, %v1704_v18  }
  0x9a   : > { %v271_v26 = vpop.permute.xlu1 %270 }
  0x9b   : > { %v247_v27 = vpop.permute.xlu0 %246  ;;  %vm301_vm1 = vcmp.eq.s32.totalorder %v1759_v25, %v271_v26 }
  0x9c   : > { %vm293_vm0 = vcmp.eq.s32.totalorder %v1759_v25, %v247_v27  ;;  %v1771_v32 = vsel %vm301_vm1, 1.0, %v1544_v28  ;;  %vm898_vm1 = vcmp.ne.s32.totalorder %v1634_v2, 0 }
  0x9d   : > { %1423 = vset.pattern.permute.xlu1 %v1543_v17  ;;  %v1765_v29 = vsel %vm293_vm0, 1.0, %v1544_v28  ;;  %vm912_vm0 = vcmp.ne.s32.totalorder %v1674_v12, 0 }
  0x9e   : > { %v274_v30 = vpop.permute.xlu1 %273  ;;  %597 = vperm.xlu1 %1423, %v1663_v9   ;;  %v1295_v20 = vsel %vm912_vm0, 1.0, %v1544_v28 }
  0x9f   : > { %v250_v31 = vpop.permute.xlu0 %249  ;;  %vm302_vm2 = vcmp.eq.s32.totalorder %v1759_v25, %v274_v30 }
  0xa0   : > { %vm294_vm3 = vcmp.eq.s32.totalorder %v1759_v25, %v250_v31  ;;  %v1774_v33 = vsel %vm302_vm2, 1.0, %v1544_v28  ;;  %vm901_vm2 = vcmp.ne.s32.totalorder %v1647_v5, 0 }
  0xa1   : > { %v1777_v34 = vsel %vm294_vm3, 1.0, %v1544_v28  ;;  %v345_v35 = vpack.c.bf16 %v1774_v33, %v1771_v32  ;;  %v1284_v2 = vsel %vm901_vm2, 1.0, %v1544_v28  ;;  %vm903_vm3 = vcmp.ne.s32.totalorder %v1663_v9, 0 }
  0xa2   : > { %v341_v36 = vpack.c.bf16 %v1777_v34, %v1765_v29  ;;  %v256_v37 = vpop.permute.xlu1 %255  ;;  %618 = vperm.xlu1 %1423, %v1718_v19   ;;  %v989_v19 = vsel %vm946_vm9, %v1295_v20, 0.0  ;;  %v956_v31 = vsel %vm946_vm9, %v1284_v2, 0.0 }
  0xa3   : > { %v253_v38 = vpop.permute.xlu0 %252  ;;  %vm296_vm4 = vcmp.eq.s32.totalorder %v1759_v25, %v256_v37  ;;  %v1286_v37 = vsel %vm903_vm3, 1.0, %v1544_v28 }
  0xa4   : > { %vm295_vm5 = vcmp.eq.s32.totalorder %v1759_v25, %v253_v38  ;;  %v1787_v39 = vsel %vm296_vm4, 1.0, %v1544_v28  ;;  %vm905_vm4 = vcmp.ne.s32.totalorder %v1699_v16, 0 }
  0xa5   : > { %v1790_v40 = vsel %vm295_vm5, 1.0, %v1544_v28  ;;  %vm907_vm5 = vcmp.ne.s32.totalorder %v1639_v3, 0 }
  0xa6   : > { %v342_v41 = vpack.c.bf16 %v1787_v39, %v1790_v40  ;;  %v280_v42 = vpop.permute.xlu1 %279  ;;  %600 = vperm.xlu1 %1423, %v1669_v11   ;;  %v1290_v51 = vsel %vm907_vm5, 1.0, %v1544_v28 }
  0xa7   : > { %v277_v43 = vpop.permute.xlu0 %276  ;;  %vm304_vm7 = vcmp.eq.s32.totalorder %v1759_v25, %v280_v42  ;;  %v962_v42 = vsel %vm946_vm9, %v1286_v37, 0.0  ;;  %v974_v16 = vsel %vm946_vm9, %v1290_v51, 0.0 }
  0xa8   : > { %vm303_vm8 = vcmp.eq.s32.totalorder %v1759_v25, %v277_v43  ;;  %v1800_v45 = vsel %vm304_vm7, 1.0, %v1544_v28  ;;  %v1288_v43 = vsel %vm905_vm4, 1.0, %v1544_v28  ;;  %vm911_vm7 = vcmp.ne.s32.totalorder %v1694_v15, 0 }
  0xa9   : > { %v1803_v46 = vsel %vm303_vm8, 1.0, %v1544_v28  ;;  %v968_v9 = vsel %vm946_vm9, %v1288_v43, 0.0  ;;  %v1294_v63 = vsel %vm911_vm7, 1.0, %v1544_v28  ;;  %vm913_vm8 = vcmp.ne.s32.totalorder %v1704_v18, 0 }
  0xaa   : > { %v346_v47 = vpack.c.bf16 %v1800_v45, %v1803_v46  ;;  %624 = vperm.xlu1 %1423, %v1674_v12   ;;  %v1281_v12 = vsel %vm898_vm1, 1.0, %v1544_v28  ;;  %vm741_vm4 = vcmask 523264  }
  0xab   : > { %v1808_v48 = vpop.permute.xlu0 %261  ;;  %v1812_v50 = vpop.permute.xlu1 %361  ;;  %v947_v26 = vsel %vm946_vm9, %v1281_v12, 0.0 }
  0xac   : > { %vm406_vm13 = vcmp.eq.s32.totalorder %v1759_v25, %v1812_v50  ;;  %vm298_vm0 = vcmp.eq.s32.totalorder %v1759_v25, %v1808_v48 }
  0xae   : > { %951 = vadd.xlane.f32.xlu0 %v950_v49 }
  0xaf   : > { %v1815_v52 = vpop.permute.xlu0 %264  ;;  %v1819_v54 = vpop.permute.xlu1 %382 }
  0xb0   : > { %vm413_vm14 = vcmp.eq.s32.totalorder %v1759_v25, %v1819_v54  ;;  %v1222_v54 = vsel %vm406_vm13, 1.0, %v1544_v28 }
  0xb2   : > { %954 = vadd.xlane.f32.xlu0 %v953_v53 }
  0xb3   : > { %v1823_v56 = vpop.permute.xlu0 %288  ;;  %v1826_v58 = vpop.permute.xlu1 %364 }
  0xb4   : > { %vm407_vm15 = vcmp.eq.s32.totalorder %v1759_v25, %v1826_v58  ;;  %v1229_v58 = vsel %vm413_vm14, 1.0, %v1544_v28 }
  0xb5   : > { %v1223_v20 = vsel %vm407_vm15, 1.0, %v1544_v28 }
  0xb6   : > { %960 = vadd.xlane.f32.xlu0 %v959_v57  ;;  %v1292_v57 = vsel %vm909_vm6, 1.0, %v1544_v28 }
  0xb7   : > { %v1831_v61 = vpop.permute.xlu1 %388  ;;  %v980_v3 = vsel %vm946_vm9, %v1292_v57, 0.0 }
  0xb8   : > { %v1833_v62 = vpop.permute.xlu0 %358  ;;  %vm415_vm1 = vcmp.eq.s32.totalorder %v1759_v25, %v1831_v61  ;;  %v350_v61 = vadd.bf16 0, %v342_v41 }
  0xb9   : > { %vm405_vm10 = vcmp.eq.s32.totalorder %v1759_v25, %v1833_v62  ;;  %v1964_v33 = vsel %vm415_vm1, 1.0, %v1544_v28 }
  0xba   : > { %966 = vadd.xlane.f32.xlu0 %v965_v60  ;;  %v1221_v13 = vsel %vm405_vm10, 1.0, %v1544_v28 }
  0xbb   : > { %v453_v29 = vpack.c.bf16 %v1222_v54, %v1221_v13 }
  0xbc   : > { %v1838_v4 = vpop.permute.xlu0 %385  ;;  %v1841_v10 = vpop.permute.xlu1 %470 }
  0xbd   : > { %vm414_vm11 = vcmp.eq.s32.totalorder %v1759_v25, %v1838_v4  ;;  %v349_v4 = vadd.bf16 0, %v341_v36  ;;  %vm517_vm2 = vcmp.eq.s32.totalorder %v1759_v25, %v1841_v10  ;;  %v353_v36 = vadd.bf16 0, %v345_v35 }
  0xbe   : > { %972 = vadd.xlane.f32.xlu0 %v971_v0  ;;  %v986_v0 = vsel %vm946_vm9, %v1294_v63, 0.0  ;;  %v1958_v10 = vadd.bf16 0, %v346_v47  ;;  %v1237_v35 = vsel %vm517_vm2, 1.0, %v1544_v28 }
  0xbf   : > { %v461_v40 = vadd.bf16 %v453_v29, %v349_v4 }
  0xc0   : > { %v1845_v11 = vpop.permute.xlu0 %367  ;;  %v1848_v14 = vpop.permute.xlu1 %494 }
  0xc1   : > { %vm408_vm12 = vcmp.eq.s32.totalorder %v1759_v25, %v1845_v11  ;;  %v1230_v11 = vsel %vm414_vm11, 1.0, %v1544_v28  ;;  %vm525_vm5 = vcmp.eq.s32.totalorder %v1759_v25, %v1848_v14  ;;  %vm299_vm11 = vcmp.eq.s32.totalorder %v1759_v25, %v1815_v52 }
  0xc2   : > { %978 = vadd.xlane.f32.xlu0 %v977_v1  ;;  %v1296_v1 = vsel %vm913_vm8, 1.0, %v1544_v28  ;;  %v457_v48 = vpack.c.bf16 %v1230_v11, %v1229_v58  ;;  %v1245_v47 = vsel %vm525_vm5, 1.0, %v1544_v28 }
  0xc3   : > { %v992_v18 = vsel %vm946_vm9, %v1296_v1, 0.0 }
  0xc4   : > { %v1852_v17 = vpop.permute.xlu0 %391  ;;  %v1855_v21 = vpop.permute.xlu1 %497  ;;  %v465_v45 = vadd.bf16 %v457_v48, %v353_v36 }
  0xc5   : > { %vm526_vm3 = vcmp.eq.s32.totalorder %v1759_v25, %v1855_v21  ;;  %v1210_v21 = vsel %vm298_vm0, 1.0, %v1544_v28  ;;  %vm416_vm6 = vcmp.eq.s32.totalorder %v1759_v25, %v1852_v17 }
  0xc6   : > { %984 = vadd.xlane.f32.xlu0 %v983_v8  ;;  %v1224_v8 = vsel %vm408_vm12, 1.0, %v1544_v28  ;;  %v1246_v39 = vsel %vm526_vm3, 1.0, %v1544_v28  ;;  %v1232_v17 = vsel %vm416_vm6, 1.0, %v1544_v28 }
  0xc8   : > { %v1859_v22 = vpop.permute.xlu0 %370  ;;  %v1861_v23 = vpop.permute.xlu1 %479 }
  0xc9   : > { %vm520_vm12 = vcmp.eq.s32.totalorder %v1759_v25, %v1861_v23  ;;  %vm409_vm14 = vcmp.eq.s32.totalorder %v1759_v25, %v1859_v22  ;;  %v458_v23 = vpack.c.bf16 %v1232_v17, %v1964_v33 }
  0xca   : > { %990 = vadd.xlane.f32.xlu0 %v989_v19  ;;  %v454_v19 = vpack.c.bf16 %v1224_v8, %v1223_v20 }
  0xcc   : > { %v1865_v24 = vpop.permute.xlu0 %397  ;;  %v1868_v27 = vpop.permute.xlu1 %503  ;;  %v462_v46 = vadd.bf16 %v454_v19, %v350_v61  ;;  %v1211_v19 = vsel %vm299_vm11, 1.0, %v1544_v28 }
  0xce   : > { %948 = vadd.xlane.f32.xlu1 %v947_v26  ;;  %v569_v26 = vpack.c.bf16 %v1246_v39, %v1245_v47 }
  0xd0   : > { %v1872_v30 = vpop.permute.xlu0 %379  ;;  %v577_v1 = vadd.bf16 %v569_v26, %v465_v45 }
  0xd1   : > { %v1876_v38 = vpop.permute.xlu1 %585 }
  0xd2   : > { %957 = vadd.xlane.f32.xlu1 %v956_v31  ;;  %vm630_vm7 = vcmp.eq.s32.totalorder %v1759_v25, %v1876_v38 }
  0xd3   : > { %v1254_v31 = vsel %vm630_vm7, 1.0, %v1544_v28 }
  0xd4   : > { %v1879_v5 = vpop.permute.xlu0 %403 }
  0xd5   : > { %v1883_v44 = vpop.permute.xlu1 %606 }
  0xd6   : > { %963 = vadd.xlane.f32.xlu1 %v962_v42  ;;  %vm637_vm15 = vcmp.eq.s32.totalorder %v1759_v25, %v1883_v44 }
  0xd7   : > { %v1261_v57 = vsel %vm637_vm15, 1.0, %v1544_v28 }
  0xd9   : > { %v474_v49 = vpop.permute.xlu0 %473  ;;  %v1888_v53 = vpop.permute.xlu1 %588 }
  0xda   : > { %969 = vadd.xlane.f32.xlu1 %v968_v9  ;;  %vm518_vm9 = vcmp.eq.s32.totalorder %v1759_v25, %v474_v49  ;;  %v1240_v49 = vsel %vm520_vm12, 1.0, %v1544_v28  ;;  %vm631_vm0 = vcmp.eq.s32.totalorder %v1759_v25, %v1888_v53  ;;  %vm412_vm12 = vcmp.eq.s32.totalorder %v1759_v25, %v1872_v30 }
  0xdb   : > { %v1238_v12 = vsel %vm518_vm9, 1.0, %v1544_v28  ;;  %vm528_vm9 = vcmp.eq.s32.totalorder %v1759_v25, %v1868_v27 }
  0xdc   : > { %v565_v41 = vpack.c.bf16 %v1238_v12, %v1237_v35  ;;  %v1248_v22 = vsel %vm528_vm9, 1.0, %v1544_v28  ;;  %v466_v12 = vadd.bf16 %v458_v23, %v1958_v10 }
  0xdd   : > { %v1892_v55 = vpop.permute.xlu0 %476  ;;  %v1895_v59 = vpop.permute.xlu1 %612 }
  0xde   : > { %975 = vadd.xlane.f32.xlu1 %v974_v16  ;;  %vm519_vm10 = vcmp.eq.s32.totalorder %v1759_v25, %v1892_v55  ;;  %v573_v9 = vadd.bf16 %v565_v41, %v461_v40  ;;  %v1225_v55 = vsel %vm409_vm14, 1.0, %v1544_v28  ;;  %vm639_vm7 = vcmp.eq.s32.totalorder %v1759_v25, %v1895_v59 }
  0xdf   : > { %v1239_v42 = vsel %vm519_vm10, 1.0, %v1544_v28  ;;  %vm307_vm10 = vcmp.eq.s32.totalorder %v1759_v25, %v1823_v56  ;;  %v1263_v33 = vsel %vm639_vm7, 1.0, %v1544_v28  ;;  %v1228_v40 = vsel %vm412_vm12, 1.0, %v1544_v28 }
  0xe0   : > { %v1219_v30 = vsel %vm307_vm10, 1.0, %v1544_v28  ;;  %vm420_vm14 = vcmp.eq.s32.totalorder %v1759_v25, %v1879_v5 }
  0xe1   : > { %v1899_v60 = vpop.permute.xlu0 %500  ;;  %v1236_v26 = vsel %vm420_vm14, 1.0, %v1544_v28 }
  0xe2   : > { %v1903_v7 = vpop.permute.xlu1 %258  ;;  %981 = vadd.xlane.f32.xlu1 %v980_v3  ;;  %vm527_vm1 = vcmp.eq.s32.totalorder %v1759_v25, %v1899_v60  ;;  %v566_v3 = vpack.c.bf16 %v1240_v49, %v1239_v42 }
  0xe3   : > { %vm297_vm8 = vcmp.eq.s32.totalorder %v1759_v25, %v1903_v7  ;;  %v1247_v13 = vsel %vm527_vm1, 1.0, %v1544_v28 }
  0xe4   : > { %v1209_v37 = vsel %vm297_vm8, 1.0, %v1544_v28  ;;  %v574_v27 = vadd.bf16 %v566_v3, %v462_v46  ;;  %v570_v29 = vpack.c.bf16 %v1248_v22, %v1247_v13 }
  0xe5   : > { %v1906_v6 = vpop.permute.xlu0 %485  ;;  %v343_v16 = vpack.c.bf16 %v1210_v21, %v1209_v37 }
  0xe6   : > { %v1911_v15 = vpop.permute.xlu1 %282  ;;  %987 = vadd.xlane.f32.xlu1 %v986_v0  ;;  %v578_v39 = vadd.bf16 %v570_v29, %v466_v12 }
  0xe7   : > { %v351_v8 = vadd.bf16 0, %v343_v16  ;;  %vm305_vm1 = vcmp.eq.s32.totalorder %v1759_v25, %v1911_v15 }
  0xe9   : > { %v1924_v62 = vpop.permute.xlu0 %488 }
  0xea   : > { %v1933_v50 = vpop.permute.xlu1 %285  ;;  %993 = vadd.xlane.f32.xlu1 %v992_v18  ;;  %v1255_v18 = vsel %vm631_vm0, 1.0, %v1544_v28  ;;  %vm523_vm10 = vcmp.eq.s32.totalorder %v1759_v25, %v1924_v62 }
  0xeb   : > { %vm306_vm9 = vcmp.eq.s32.totalorder %v1759_v25, %v1933_v50  ;;  %v1217_v50 = vsel %vm305_vm1, 1.0, %v1544_v28 }
  0xec   : > { %v1218_v49 = vsel %vm306_vm9, 1.0, %v1544_v28 }
  0xed   : > { %v1946_v34 = vpop.permute.xlu0 %512 }
  0xee   : > { %v268_v32 = vpop.permute.xlu1 %267  ;;  %vm531_vm9 = vcmp.eq.s32.totalorder %v1759_v25, %v1946_v34 }
  0xef   : > { %vm300_vm3 = vcmp.eq.s32.totalorder %v1759_v25, %v268_v32  ;;  %v1251_v34 = vsel %vm531_vm9, 1.0, %v1544_v28 }
  0xf0   : > { %v1212_v53 = vsel %vm300_vm3, 1.0, %v1544_v28 }
  0xf1   : > { %v344_v21 = vpack.c.bf16 %v1212_v53, %v1211_v19 }
  0xf2   : > { %v583_v14 = vpop.permute.xlu0 %582  ;;  %v292_v2 = vpop.permute.xlu1 %291 }
  0xf3   : > { %vm629_vm13 = vcmp.eq.s32.totalorder %v1759_v25, %v583_v14  ;;  %vm308_vm8 = vcmp.eq.s32.totalorder %v1759_v25, %v292_v2  ;;  %v352_v41 = vadd.bf16 0, %v344_v21 }
  0xf4   : > { %v1253_v38 = vsel %vm629_vm13, 1.0, %v1544_v28  ;;  %v1220_v52 = vsel %vm308_vm8, 1.0, %v1544_v28 }
  0xf5   : > { %v677_v43 = vpack.c.bf16 %v1254_v31, %v1253_v38  ;;  %v348_v45 = vpack.c.bf16 %v1220_v52, %v1219_v30 }
  0xf6   : > { %v610_v51 = vpop.permute.xlu0 %609 }
  0xf7   : > { %vm638_vm2 = vcmp.eq.s32.totalorder %v1759_v25, %v610_v51  ;;  %v685_v44 = vadd.bf16 %v677_v43, %v573_v9  ;;  %v374_v7 = vpop.permute.xlu1 %373  ;;  %v356_v31 = vadd.bf16 0, %v348_v45 }
  0xf8   : > { %v1262_v63 = vsel %vm638_vm2, 1.0, %v1544_v28  ;;  %vm410_vm5 = vcmp.eq.s32.totalorder %v1759_v25, %v374_v7  ;;  %vm522_vm2 = vcmp.eq.s32.totalorder %v1759_v25, %v1906_v6 }
  0xf9   : > { %v681_v0 = vpack.c.bf16 %v1262_v63, %v1261_v57  ;;  %1327 = vmatprep.mubr.msk.bf16.mxu0 %vm741_vm4, %v685_v44  ;;  %v1226_v4 = vsel %vm410_vm5, 1.0, %v1544_v28  ;;  %vm418_vm5 = vcmp.eq.s32.totalorder %v1759_v25, %v1865_v24  ;;  %v1242_v15 = vsel %vm522_vm2, 1.0, %v1544_v28 }
  0xfa   : > { %v592_v11 = vpop.permute.xlu0 %591  ;;  %v455_v54 = vpack.c.bf16 %v1226_v4, %v1225_v55  ;;  %v347_v55 = vpack.c.bf16 %v1218_v49, %v1217_v50  ;;  %v1234_v3 = vsel %vm418_vm5, 1.0, %v1544_v28 }
  0xfb   : > { %vm632_vm6 = vcmp.eq.s32.totalorder %v1759_v25, %v592_v11  ;;  %v689_v58 = vadd.bf16 %v681_v0, %v577_v1  ;;  %v395_v60 = vpop.permute.xlu1 %394 }
  0xfc   : > { %v1256_v20 = vsel %vm632_vm6, 1.0, %v1544_v28  ;;  %v2030_v36 = vadd.bf16 %v455_v54, %v351_v8  ;;  %vm417_vm3 = vcmp.eq.s32.totalorder %v1759_v25, %v395_v60  ;;  %v355_v0 = vadd.bf16 0, %v347_v55 }
  0xfd   : > { %v678_v48 = vpack.c.bf16 %v1256_v20, %v1255_v18  ;;  %1335 = vmatprep.mubr.msk.bf16.mxu1 %vm741_vm4, %v689_v58  ;;  %v1233_v6 = vsel %vm417_vm3, 1.0, %v1544_v28  ;;  %v1243_v20 = vsel %vm523_vm10, 1.0, %v1544_v28 }
  0xfe   : > { %v616_v61 = vpop.permute.xlu0 %615  ;;  %v459_v24 = vpack.c.bf16 %v1234_v3, %v1233_v6 }
  0xff   : > { %v686_v32 = vadd.bf16 %v678_v48, %v574_v27  ;;  %vm640_vm13 = vcmp.eq.s32.totalorder %v1759_v25, %v616_v61  ;;  %v377_v56 = vpop.permute.xlu1 %376 }
 0x100   : > { %v1264_v35 = vsel %vm640_vm13, 1.0, %v1544_v28  ;;  %vm411_vm11 = vcmp.eq.s32.totalorder %v1759_v25, %v377_v56  ;;  %v467_v27 = vadd.bf16 %v459_v24, %v355_v0 }
 0x101   : > { %v682_v10 = vpack.c.bf16 %v1264_v35, %v1263_v33  ;;  %1328 = vmatmul.mubr.msk.bf16.vlgmr.msra.gmra.mrb[0].mxu0 %vm741_vm4, %v686_v32  ;;  %v1227_v59 = vsel %vm411_vm11, 1.0, %v1544_v28 }
 0x102   : > { %v456_v47 = vpack.c.bf16 %v1228_v40, %v1227_v59  ;;  %v595_v9 = vpop.permute.xlu0 %594 }
 0x103   : > { %v690_v46 = vadd.bf16 %v682_v10, %v578_v39  ;;  %v401_v14 = vpop.permute.xlu1 %400  ;;  %vm633_vm7 = vcmp.eq.s32.totalorder %v1759_v25, %v595_v9 }
 0x104   : > { %v2056_v17 = vadd.bf16 %v456_v47, %v352_v41  ;;  %vm419_vm15 = vcmp.eq.s32.totalorder %v1759_v25, %v401_v14  ;;  %v1257_v1 = vsel %vm633_vm7, 1.0, %v1544_v28 }
 0x105   : > { %1336 = vmatmul.mubr.msk.bf16.vlgmr.msra.gmra.mrb[0].mxu1 %vm741_vm4, %v690_v46  ;;  %v1235_v2 = vsel %vm419_vm15, 1.0, %v1544_v28 }
 0x106   : > { %v460_v37 = vpack.c.bf16 %v1236_v26, %v1235_v2  ;;  %v622_v16 = vpop.permute.xlu0 %621 }
 0x107   : > { %vm642_vm11 = vcmp.eq.s32.totalorder %v1759_v25, %v622_v16 }
 0x108   : > { %v2062_v5 = vadd.bf16 %v460_v37, %v356_v31  ;;  %v483_v38 = vpop.permute.xlu1 %482  ;;  %v1266_v60 = vsel %vm642_vm11, 1.0, %v1544_v28 }
 0x109   : > { %vm521_vm0 = vcmp.eq.s32.totalorder %v1759_v25, %v483_v38 }
 0x10a   : > { %v1241_v44 = vsel %vm521_vm0, 1.0, %v1544_v28  ;;  %v604_v22 = vpop.permute.xlu0 %603 }
 0x10b   : > { %v567_v57 = vpack.c.bf16 %v1242_v15, %v1241_v44  ;;  %vm636_vm0 = vcmp.eq.s32.totalorder %v1759_v25, %v604_v22 }
 0x10c   : > { %v507_v42 = vpop.permute.xlu1 %506  ;;  %v1260_v32 = vsel %vm636_vm0, 1.0, %v1544_v28 }
 0x10d   : > { %vm529_vm8 = vcmp.eq.s32.totalorder %v1759_v25, %v507_v42  ;;  %v575_v4 = vadd.bf16 %v567_v57, %v2030_v36 }
 0x10e   : > { %v1249_v18 = vsel %vm529_vm8, 1.0, %v1544_v28  ;;  %v628_v12 = vpop.permute.xlu0 %627 }
 0x10f   : > { %vm644_vm2 = vcmp.eq.s32.totalorder %v1759_v25, %v628_v12 }
 0x110   : > { %v510_v43 = vpop.permute.xlu1 %509  ;;  %v1268_v30 = vsel %vm644_vm2, 1.0, %v1544_v28 }
 0x111   : > { %vm530_vm6 = vcmp.eq.s32.totalorder %v1759_v25, %v510_v43 }
 0x112   : > { %v1250_v63 = vsel %vm530_vm6, 1.0, %v1544_v28 }
 0x113   : > { %v571_v11 = vpack.c.bf16 %v1250_v63, %v1249_v18 }
 0x114   : > { %v492_v23 = vpop.permute.xlu1 %491 }
 0x115   : > { %vm524_vm12 = vcmp.eq.s32.totalorder %v1759_v25, %v492_v23  ;;  %v579_v36 = vadd.bf16 %v571_v11, %v467_v27 }
 0x116   : > { %v1244_v54 = vsel %vm524_vm12, 1.0, %v1544_v28 }
 0x117   : > { %v568_v48 = vpack.c.bf16 %v1244_v54, %v1243_v20 }
 0x118   : > { %v516_v51 = vpop.permute.xlu1 %515 }
 0x119   : > { %vm532_vm14 = vcmp.eq.s32.totalorder %v1759_v25, %v516_v51  ;;  %v576_v52 = vadd.bf16 %v568_v48, %v2056_v17 }
 0x11a   : > { %v1252_v61 = vsel %vm532_vm14, 1.0, %v1544_v28 }
 0x11b   : > { %v572_v35 = vpack.c.bf16 %v1252_v61, %v1251_v34 }
 0x11d   : > { %v598_v7 = vpop.permute.xlu1 %597  ;;  %v580_v59 = vadd.bf16 %v572_v35, %v2062_v5 }
 0x11e   : > { %vm634_vm13 = vcmp.eq.s32.totalorder %v1759_v25, %v598_v7 }
 0x11f   : > { %v1258_v13 = vsel %vm634_vm13, 1.0, %v1544_v28 }
 0x120   : > { %v679_v8 = vpack.c.bf16 %v1258_v13, %v1257_v1 }
 0x121   : > { %v619_v58 = vpop.permute.xlu1 %618 }
 0x122   : > { %v687_v53 = vadd.bf16 %v679_v8, %v575_v4  ;;  %vm641_vm15 = vcmp.eq.s32.totalorder %v1759_v25, %v619_v58 }
 0x123   : > { %v1265_v29 = vsel %vm641_vm15, 1.0, %v1544_v28 }
 0x124   : > { %v683_v19 = vpack.c.bf16 %v1266_v60, %v1265_v29  ;;  %1331 = vmatprep.mubr.msk.bf16.mxu0 %vm741_vm4, %v687_v53 }
 0x125   : > { %v601_v21 = vpop.permute.xlu1 %600 }
 0x126   : > { %v691_v62 = vadd.bf16 %v683_v19, %v579_v36  ;;  %vm635_vm1 = vcmp.eq.s32.totalorder %v1759_v25, %v601_v21 }
 0x127   : > { %v1259_v33 = vsel %vm635_vm1, 1.0, %v1544_v28 }
 0x128   : > { %v680_v56 = vpack.c.bf16 %v1260_v32, %v1259_v33  ;;  %1339 = vmatprep.mubr.msk.bf16.mxu1 %vm741_vm4, %v691_v62 }
 0x129   : > { %v625_v39 = vpop.permute.xlu1 %624 }
 0x12a   : > { %v688_v10 = vadd.bf16 %v680_v56, %v576_v52  ;;  %vm643_vm3 = vcmp.eq.s32.totalorder %v1759_v25, %v625_v39 }
 0x12b   : > { %v1267_v40 = vsel %vm643_vm3, 1.0, %v1544_v28 }
 0x12c   : > { %v684_v41 = vpack.c.bf16 %v1268_v30, %v1267_v40  ;;  %1332 = vmatmul.mubr.msk.bf16.gmra.mrb[4].mxu0 %vm741_vm4, %v688_v10 }
 0x12e   : > { %v692_v45 = vadd.bf16 %v684_v41, %v580_v59 }
 0x130   : > { %1340 = vmatmul.mubr.msk.bf16.gmra.mrb[4].mxu1 %vm741_vm4, %v692_v45 }
 0x13b   : > { %v952_v46 = vpop.xlane.xlu0 %951 }
 0x13c   : > { %v996_v9 = vmax.f32 %v952_v46, 1.0 }
 0x13f   : > { %v955_v14 = vpop.xlane.xlu0 %954 }
 0x140   : > { %v997_v5 = vmax.f32 %v955_v14, 1.0 }
 0x142   : > { %1428 = vrcp.f32 %v997_v5 }
 0x143   : > { %v2121_v26 = vpop.xlane.xlu0 %960 }
 0x144   : > { %v999_v12 = vmax.f32 %v2121_v26, 1.0 }
 0x147   : > { %v2125_v2 = vpop.xlane.xlu0 %966 }
 0x148   : > { %v1001_v61 = vmax.f32 %v2125_v2, 1.0 }
 0x14b   : > { %v973_v31 = vpop.xlane.xlu0 %972 }
 0x14c   : > { %v1003_v51 = vmax.f32 %v973_v31, 1.0  ;;  %v1429_v50 = vpop.eup %1428 }
 0x14f   : > { %v979_v42 = vpop.xlane.xlu0 %978 }
 0x150   : > { %v1005_v49 = vmax.f32 %v979_v42, 1.0 }
 0x153   : > { %v985_v36 = vpop.xlane.xlu0 %984 }
 0x154   : > { %v1007_v52 = vmax.f32 %v985_v36, 1.0 }
 0x157   : > { %v991_v19 = vpop.xlane.xlu0 %990 }
 0x158   : > { %v1009_v21 = vmax.f32 %v991_v19, 1.0 }
 0x15b   : > { %v949_v47 = vpop.xlane.xlu1 %948 }
 0x15c   : > { %v995_v38 = vmax.f32 %v949_v47, 1.0 }
 0x15e   : > { %1430 = vrcp.f32 %v995_v38 }
 0x15f   : > { %v958_v17 = vpop.xlane.xlu1 %957 }
 0x160   : > { %v998_v43 = vmax.f32 %v958_v17, 1.0 }
 0x162   : > { %1432 = vrcp.f32 %v998_v43 }
 0x163   : > { %v2123_v25 = vpop.xlane.xlu1 %963  ;;  %1434 = vrcp.f32 %v996_v9 }
 0x164   : > { %1436 = vrcp.f32 %v1005_v49  ;;  %v1000_v32 = vmax.f32 %v2123_v25, 1.0 }
 0x165   : > { %1438 = vrcp.f32 %v1003_v51 }
 0x167   : > { %v2127_v28 = vpop.xlane.xlu1 %969 }
 0x168   : > { %v1431_v15 = vpop.eup %1430  ;;  %v1002_v34 = vmax.f32 %v2127_v28, 1.0 }
 0x16b   : > { %v976_v37 = vpop.xlane.xlu1 %975 }
 0x16c   : > { %v1004_v44 = vmax.f32 %v976_v37, 1.0  ;;  %v1433_v55 = vpop.eup %1432 }
 0x16d   : > { %v1435_v57 = vpop.eup %1434 }
 0x16e   : > { %v1437_v7 = vpop.eup %1436 }
 0x16f   : > { %v982_v23 = vpop.xlane.xlu1 %981  ;;  %v1439_v1 = vpop.eup %1438 }
 0x170   : > { %v1006_v16 = vmax.f32 %v982_v23, 1.0 }
 0x172   : > { %1440 = vrcp.f32 %v1006_v16 }
 0x173   : > { %1442 = vrcp.f32 %v1004_v44  ;;  %v988_v48 = vpop.xlane.xlu1 %987 }
 0x174   : > { %1444 = vrcp.f32 %v999_v12  ;;  %v1008_v35 = vmax.f32 %v988_v48, 1.0 }
 0x175   : > { %1446 = vrcp.f32 %v1001_v61 }
 0x176   : > { %1448 = vrcp.f32 %v1009_v21 }
 0x177   : > { %v994_v62 = vpop.xlane.xlu1 %993  ;;  %1450 = vrcp.f32 %v1002_v34 }
 0x178   : > { %v1010_v33 = vmax.f32 %v994_v62, 1.0  ;;  %1452 = vrcp.f32 %v1000_v32 }
 0x17a   : > { %1454 = vrcp.f32 %v1010_v33 }
 0x17b   : > { %1456 = vrcp.f32 %v1007_v52 }
 0x17c   : > { %v1441_v13 = vpop.eup %1440  ;;  %1458 = vrcp.f32 %v1008_v35 }
 0x17d   : > { %v1443_v8 = vpop.eup %1442 }
 0x17e   : > { %v1445_v56 = vpop.eup %1444 }
 0x17f   : > { %v1447_v39 = vpop.eup %1446 }
 0x180   : > { %v1449_v30 = vpop.eup %1448 }
 0x181   : > { %v1451_v41 = vpop.eup %1450 }
 0x182   : > { %v1453_v47 = vpop.eup %1452 }
 0x184   : > { %v1455_v26 = vpop.eup %1454 }
 0x185   : > { %v1457_v28 = vpop.eup %1456 }
 0x186   : > { %v1459_v42 = vpop.eup %1458 }
 0x1d4   : > { %v1329_v6 = vpop.f32.mrb[0].mxu0 }
 0x1d5   : > { %v1061_v3 = vmul.f32 %v1429_v50, %v1329_v6  ;;  %v800_v63 = vpop.f32.mrb[1].mxu0 }
 0x1d6   : > { %v1059_v24 = vmul.f32 %v1431_v15, %v800_v63  ;;  %v1330_v0 = vpop.f32.mrb[2].mxu0 }
 0x1d7   : > { %1077 = vst [vmem:[%s2131_s18 + $0x10] sm:$0xff] %v1061_v3  ;;  %v1062_v22 = vmul.f32 %v1433_v55, %v1330_v0  ;;  %v803_v18 = vpop.f32.mrb[3].mxu0 }
 0x1d8   : > { %1075 = vst [vmem:[%s2131_s18] sm:$0xff] %v1059_v24  ;;  %v1060_v4 = vmul.f32 %v1435_v57, %v803_v18  ;;  %v1337_v11 = vpop.f32.mrb[0].mxu1 }
 0x1d9   : > { %1078 = vst [vmem:[%s2131_s18 + $0x18] sm:$0xff] %v1062_v22  ;;  %v1069_v54 = vmul.f32 %v1437_v7, %v1337_v11  ;;  %v832_v58 = vpop.f32.mrb[1].mxu1 }
 0x1da   : > { %1076 = vst [vmem:[%s2131_s18 + $0x8] sm:$0xff] %v1060_v4  ;;  %v1067_v27 = vmul.f32 %v1439_v1, %v832_v58  ;;  %v1338_v53 = vpop.f32.mrb[2].mxu1 }
 0x1db   : > { %1085 = vst [vmem:[%s2131_s18 + $0x50] sm:$0xff] %v1069_v54  ;;  %v1070_v20 = vmul.f32 %v1441_v13, %v1338_v53  ;;  %v835_v60 = vpop.f32.mrb[3].mxu1 }
 0x1dc   : > { %1083 = vst [vmem:[%s2131_s18 + $0x40] sm:$0xff] %v1067_v27  ;;  %v1068_v29 = vmul.f32 %v1443_v8, %v835_v60 }
 0x1dd   : > { %1086 = vst [vmem:[%s2131_s18 + $0x58] sm:$0xff] %v1070_v20 }
 0x1de   : > { %1084 = vst [vmem:[%s2131_s18 + $0x48] sm:$0xff] %v1068_v29 }
 0x1ff   : > { %v1333_v10 = vpop.f32.mrb[4].mxu0 }
 0x200   : > { %v1065_v40 = vmul.f32 %v1447_v39, %v1333_v10  ;;  %v816_v59 = vpop.f32.mrb[5].mxu0 }
 0x201   : > { %v1063_v45 = vmul.f32 %v1445_v56, %v816_v59  ;;  %v1334_v46 = vpop.f32.mrb[6].mxu0 }
 0x202   : > { %1081 = vst [vmem:[%s2131_s18 + $0x30] sm:$0xff] %v1065_v40  ;;  %v1066_v14 = vmul.f32 %v1451_v41, %v1334_v46  ;;  %v819_v17 = vpop.f32.mrb[7].mxu0 }
 0x203   : > { %1079 = vst [vmem:[%s2131_s18 + $0x20] sm:$0xff] %v1063_v45  ;;  %v1064_v25 = vmul.f32 %v1453_v47, %v819_v17  ;;  %v1341_v2 = vpop.f32.mrb[4].mxu1  ;;  %1098 = sbr.rel (!%p1603_p4) target bundleno = 550 (0x226), region = 40 }
 0x204   : > { %1082 = vst [vmem:[%s2131_s18 + $0x38] sm:$0xff] %v1066_v14  ;;  %v1073_v31 = vmul.f32 %v1449_v30, %v1341_v2  ;;  %v848_v37 = vpop.f32.mrb[5].mxu1 }
 0x205   : > { %1080 = vst [vmem:[%s2131_s18 + $0x28] sm:$0xff] %v1064_v25  ;;  %v1071_v5 = vmul.f32 %v1457_v28, %v848_v37  ;;  %v1342_v38 = vpop.f32.mrb[6].mxu1 }
 0x206   : > { %1089 = vst [vmem:[%s2131_s18 + $0x70] sm:$0xff] %v1073_v31  ;;  %v1074_v43 = vmul.f32 %v1455_v26, %v1342_v38  ;;  %v851_v9 = vpop.f32.mrb[7].mxu1 }
 0x207   : > { %1087 = vst [vmem:[%s2131_s18 + $0x60] sm:$0xff] %v1071_v5  ;;  %v1072_v23 = vmul.f32 %v1459_v42, %v851_v9 }
 0x208   : > { %1090 = vst [vmem:[%s2131_s18 + $0x78] sm:$0xff] %v1074_v43 }
 0x209   : > { %1088 = vst [vmem:[%s2131_s18 + $0x68] sm:$0xff] %v1072_v23 }
 0x20a   : > { %s2234_s24 = smov (!%p1101_p12, %s1100_s24), 16 }
 0x20b   : > { %s2160_s25 = sshll.u32 %s2234_s24, 7 }
 0x20c   : > { %s1105_s26 = ssub.s32 2048, %s2160_s25 }
 0x20d   : > { %1106 = vsyncadd %s2155_s20, %s1105_s26  ;;  %p1300_p13 = scmp.ne.s32.totalorder %s2160_s25, 0  ;;  %s1306_s27 = sshll.u32 %s1530_s12, 11 }
 0x20e   : > { %s2169_s29 = scalar_lea.hbm %s2223_s2, %s1306_s27  ;;  %s1111_s23 = sshll.u32 %s2131_s18, 4  ;;  %s2172_s23 = int_to_ptr.vmem [resolvable:$true] %s1111_s23 }
 0x20f   : > { %s1460_s30 = scalar_lea.vmem %s2172_s23, %s2160_s25  ;;  %s1545_s3 = smov [#allocation3]  }
 0x210   : > { %p1461_p0 = scmp.ne.s32.totalorder %s2172_s23, %s1460_s30  ;;  %s1464_s4 = sshll.u32 %s1545_s3, 4  ;;  %s1465_s4 = int_to_ptr.vmem [resolvable:$false] %s1464_s4 }
 0x211   : > { %s1466_s12 = scalar_lea.vmem %s1465_s4, 4096  ;;  %p1467_p3 = scmp.lt.s32.totalorder %s2172_s23, %s1465_s4 }
 0x212   : > { %p1462_p1 = pnand %p1461_p0, %p1300_p13  ;;  %p1468_p4 = scmp.lt.s32.totalorder %s1466_s12, %s1460_s30 }
 0x214   : > { %p1463_p2 = pneg %p1462_p1  ;;  %p1469_p5 = por %p1468_p4, %p1467_p3 }
 0x216   : > { %p1470_p6 = pnand %p1469_p5, %p1463_p2 }
 0x218   : > { %1473 = shalt.err (!%p1470_p6)
}
 0x219   : > { %s1474_s5 = scalar_lea.hbm %s2169_s29, %s2160_s25  ;;  %s1478_s8 = scalar_lea.hbm %s2223_s2, 2560 }
 0x21a   : > { %p1475_p7 = scmp.ne.s32.totalorder %s2169_s29, %s1474_s5  ;;  %p1479_p11 = scmp.lt.u32.totalorder %s2169_s29, %s2223_s2 }
 0x21b   : > { %p1480_p12 = scmp.lt.u32.totalorder %s1478_s8, %s1474_s5  ;;  %p1482_p1 = scmp.lt.u32.totalorder %s1474_s5, %s2169_s29 }
 0x21c   : > { %p1476_p9 = pnand %p1475_p7, %p1300_p13 }
 0x21d   : > { %p1481_p0 = por %p1480_p12, %p1479_p11 }
 0x21e   : > { %p1477_p10 = pneg %p1476_p9 }
 0x21f   : > { %p1483_p2 = por %p1482_p1, %p1481_p0 }
 0x221   : > { %p1484_p3 = pnand %p1483_p2, %p1477_p10 }
 0x223   : > { %1487 = shalt.err (!%p1484_p3)
}
 0x224   : > { %s1546_s18 = smov 128   ;;  %s1547_s24 = smov 8  }
 0x225   : > { %1117 = dma.vmem_to_hbm [thread:$0]  (%p1300_p13), %s2172_s23, %s2160_s25, %s2169_s29, %s2155_s20, %s1546_s18, %s1546_s18, %s1547_s24  }
 0x226 PF: > { %p1356_p4 = scmp.ge.s32.totalorder %s1538_s14, 2  ;;  %s1126_s26 = sand.u32 1, %s1518_s9  }
 0x227   : > { %s1127_s27 = scalar_lea.sflag [#allocation4], %s1126_s26 }
 0x228   : > { %p1353_p5 = pnand %p1356_p4, %p1610_p8 }
 0x22a   : > { %1513 = dma.done.wait (!%p1353_p5), %s1127_s27, 2048  }
 0x22b   : > { %1515 = vsyncadd (!%p1353_p5), %s1127_s27, 4294965248  ;;  %s15_s14 = sadd.s32 1, %s1538_s14   ;;  %s2226_s9 = smov %s1522_s10 }
 0x22c   : > { %p12_p6 = scmp.ge.s32.totalorder %s15_s14, 4   ;;  %s2227_s10 = smov %s1526_s11 }
 0x22d   : > { %s2228_s11 = smov %s1616_s22  ;;  %s2229_s12 = smov %s1534_s13 }
 0x22e   : > { %s2230_s13 = smov %s2232_s17  ;;  %14 = sbr.rel (!%p12_p6) target bundleno = 4 (0x4), region = 74 }
 0x235   :  { %1132 = vsyncpa [#allocation4], 1 }
 0x236   :  { %1134 = vsyncpa [#allocation4 + $0x1], 1 }

</bundles_post_ra>
